<compile_context>
chip_gen: v7x
topology: tpu7x:2x2x1
jax: 0.10.0
libtpu: 0.0.40
codegen_flags: <defaults>
</compile_context>

<pallas_src>
import functools

import jax
import jax.numpy as jnp
from jax.experimental import pallas as pl
from jax.experimental.pallas import tpu as pltpu


def _corr_kernel(x_ref, k_ref, o_ref, *, kh, kw, W, HoW):
    # x_ref: (1, C, H*W + kw - 1)  lane-flattened, zero-padded feature map
    # k_ref: (1, kh*kw, Co, C)     filters, tap-major / channel-minor
    # o_ref: (1, Co, Ho*W)         lane-dense output (junk cols cropped outside)
    _, Co, _ = o_ref.shape
    x = x_ref[0]                                    # (C, H*W + kw - 1), native dtype

    acc = jnp.zeros((Co, HoW), jnp.float32)
    # kh*kw static taps; each tap = one MXU matmul contracting C, f32 accumulate.
    # The static lane-offset slice of x is an XLU shift that overlaps the MXU.
    for p in range(kh):
        for q in range(kw):
            start = p * W + q
            xs = x[:, start:start + HoW]            # (C, Ho*W) static lane slice
            kpq = k_ref[0, p * kw + q, :, :]        # (Co, C)
            acc = acc + jnp.dot(kpq, xs, preferred_element_type=jnp.float32)

    o_ref[0] = acc.astype(o_ref.dtype)


@functools.partial(jax.jit, static_argnames=("out_channels",))
def correlation_pallas(x, kernel, out_channels):
    """x: (B, C, H, W); kernel: (B, out_channels * C, kh, kw)."""
    B, C, H, W = x.shape
    Bk, Ck, kh, kw = kernel.shape
    assert Bk == B and Ck == out_channels * C
    Co = out_channels
    Ho, Wo = H - kh + 1, W - kw + 1
    HoW = Ho * W                    # lane-dense output row length (incl. kw-1 junk)
    HWp = H * W + kw - 1            # padded lane length of flattened x

    # Lane-flatten x (free layout-wise for NCHW) and pad the tail so every
    # (p, q) window slice inside the kernel stays in-bounds.
    x_flat = jnp.pad(x.reshape(B, C, H * W), ((0, 0), (0, 0), (0, kw - 1)))
    # Rearrange filters once in the wrapper: (B, Co*C, kh, kw) -> (B, kh*kw, Co, C)
    # so each tap is a clean (Co, C) matrix (avoids a 5-D VMEM block with tiny
    # (kh, kw) minor dims that would pad to (8, 128) per channel).
    k_re = jnp.transpose(kernel.reshape(B, Co, C, kh, kw), (0, 3, 4, 1, 2))
    k_re = k_re.reshape(B, kh * kw, Co, C)

    kern = functools.partial(_corr_kernel, kh=kh, kw=kw, W=W, HoW=HoW)

    out_flat = pl.pallas_call(
        kern,
        out_shape=jax.ShapeDtypeStruct((B, Co, HoW), x.dtype),
        grid=(B,),
        in_specs=[
            pl.BlockSpec((1, C, HWp), lambda b: (b, 0, 0)),
            pl.BlockSpec((1, kh * kw, Co, C), lambda b: (b, 0, 0, 0)),
        ],
        out_specs=pl.BlockSpec((1, Co, HoW), lambda b: (b, 0, 0)),
        compiler_params=pltpu.CompilerParams(
            dimension_semantics=("parallel",)),
        cost_estimate=pl.CostEstimate(
            flops=2 * B * Co * C * kh * kw * Ho * Wo,
            transcendentals=0,
            bytes_accessed=(x_flat.size * x_flat.dtype.itemsize
                            + k_re.size * k_re.dtype.itemsize
                            + B * Co * HoW * x.dtype.itemsize)),
    )(x_flat, k_re)

    # Crop the kw-1 junk columns per output row introduced by the lane-dense
    # (Ho*W) layout, and restore the (B, Co, Ho, Wo) NCHW shape.
    return out_flat.reshape(B, Co, Ho, W)[:, :, :, :Wo]


def correlation_reference(x, kernel, out_channels):
    """Pure-JAX reference mirroring xcorr_slow (per-batch F.conv2d, VALID)."""
    B, C, H, W = x.shape
    _, _, kh, kw = kernel.shape
    Co = out_channels
    outs = []
    for b in range(B):
        kb = kernel[b].reshape(Co, C, kh, kw)
        ob = jax.lax.conv_general_dilated(
            x[b:b + 1], kb, window_strides=(1, 1), padding="VALID",
            dimension_numbers=("NCHW", "OIHW", "NCHW"))
        outs.append(ob)
    return jnp.concatenate(outs, axis=0)


if __name__ == "__main__":
    B, C, H, W = 2, 4, 16, 16
    Co, kh, kw = 2, 5, 5

    key = jax.random.PRNGKey(0)
    kx, kk = jax.random.split(key)
    x = jax.random.normal(kx, (B, C, H, W), dtype=jnp.float32)
    kernel = jax.random.normal(kk, (B, Co * C, kh, kw), dtype=jnp.float32)

    out = correlation_pallas(x, kernel, Co)
    out = jax.block_until_ready(out)

    ref = correlation_reference(x, kernel, Co)
    assert out.shape == (B, Co, H - kh + 1, W - kw + 1), out.shape
    assert jnp.allclose(out, ref, atol=1e-4, rtol=1e-4), (
        float(jnp.max(jnp.abs(out - ref))))

    print("KERNEL_OK")
</pallas_src>

<mosaic_0001>
module attributes {stable_mosaic.version = 11 : i64} {
  func.func @_corr_kernel(%arg0: i32, %arg1: memref<1x4x260xf32, #tpu.memory_space<vmem>>, %arg2: memref<1x25x2x4xf32, #tpu.memory_space<vmem>>, %arg3: memref<1x2x192xf32, #tpu.memory_space<vmem>>) attributes {dimension_semantics = [#tpu.dimension_semantics<parallel>], iteration_bounds = array<i64: 2>, scalar_prefetch = 0 : i64, scratch_operands = 0 : i64, tpu.core_type = #tpu.core_type<tc>, window_params = [{transform_indices = @transform_0, window_bounds = array<i64: 1, 4, 260>}, {transform_indices = @transform_1, window_bounds = array<i64: 1, 25, 2, 4>}, {transform_indices = @transform_2, window_bounds = array<i64: 1, 2, 192>}]} {
    %c0 = arith.constant 0 : index
    %c0_0 = arith.constant 0 : index
    %c0_1 = arith.constant 0 : index
    %0 = vector.load %arg1[%c0, %c0_0, %c0_1] : memref<1x4x260xf32, #tpu.memory_space<vmem>>, vector<1x4x260xf32>
    %1 = vector.shape_cast %0 : vector<1x4x260xf32> to vector<4x260xf32>
    %cst = arith.constant 0.000000e+00 : f32
    %2 = vector.broadcast %cst : f32 to vector<2x192xf32>
    %3 = vector.extract_strided_slice %1 {offsets = [0, 0], sizes = [4, 192], strides = [1, 1]} : vector<4x260xf32> to vector<4x192xf32>
    %c0_2 = arith.constant 0 : index
    %c0_3 = arith.constant 0 : index
    %c0_4 = arith.constant 0 : index
    %c0_5 = arith.constant 0 : index
    %4 = vector.load %arg2[%c0_2, %c0_3, %c0_4, %c0_5] : memref<1x25x2x4xf32, #tpu.memory_space<vmem>>, vector<1x1x2x4xf32>
    %5 = vector.shape_cast %4 : vector<1x1x2x4xf32> to vector<2x4xf32>
    %cst_6 = arith.constant dense<0.000000e+00> : vector<2x192xf32>
    %6 = tpu.matmul %5, %3, %cst_6 {dimension_numbers = #tpu.dot_dimension_numbers<[1], [0], [0], [1], [0, 0, 1, 1], [], []>} : vector<2x4xf32>, vector<4x192xf32>, vector<2x192xf32> -> vector<2x192xf32>
    %7 = arith.addf %2, %6 : vector<2x192xf32>
    %8 = vector.extract_strided_slice %1 {offsets = [0, 1], sizes = [4, 192], strides = [1, 1]} : vector<4x260xf32> to vector<4x192xf32>
    %c0_7 = arith.constant 0 : index
    %c1 = arith.constant 1 : index
    %c0_8 = arith.constant 0 : index
    %c0_9 = arith.constant 0 : index
    %9 = vector.load %arg2[%c0_7, %c1, %c0_8, %c0_9] : memref<1x25x2x4xf32, #tpu.memory_space<vmem>>, vector<1x1x2x4xf32>
    %10 = vector.shape_cast %9 : vector<1x1x2x4xf32> to vector<2x4xf32>
    %cst_10 = arith.constant dense<0.000000e+00> : vector<2x192xf32>
    %11 = tpu.matmul %10, %8, %cst_10 {dimension_numbers = #tpu.dot_dimension_numbers<[1], [0], [0], [1], [0, 0, 1, 1], [], []>} : vector<2x4xf32>, vector<4x192xf32>, vector<2x192xf32> -> vector<2x192xf32>
    %12 = arith.addf %7, %11 : vector<2x192xf32>
    %13 = vector.extract_strided_slice %1 {offsets = [0, 2], sizes = [4, 192], strides = [1, 1]} : vector<4x260xf32> to vector<4x192xf32>
    %c0_11 = arith.constant 0 : index
    %c2 = arith.constant 2 : index
    %c0_12 = arith.constant 0 : index
    %c0_13 = arith.constant 0 : index
    %14 = vector.load %arg2[%c0_11, %c2, %c0_12, %c0_13] : memref<1x25x2x4xf32, #tpu.memory_space<vmem>>, vector<1x1x2x4xf32>
    %15 = vector.shape_cast %14 : vector<1x1x2x4xf32> to vector<2x4xf32>
    %cst_14 = arith.constant dense<0.000000e+00> : vector<2x192xf32>
    %16 = tpu.matmul %15, %13, %cst_14 {dimension_numbers = #tpu.dot_dimension_numbers<[1], [0], [0], [1], [0, 0, 1, 1], [], []>} : vector<2x4xf32>, vector<4x192xf32>, vector<2x192xf32> -> vector<2x192xf32>
    %17 = arith.addf %12, %16 : vector<2x192xf32>
    %18 = vector.extract_strided_slice %1 {offsets = [0, 3], sizes = [4, 192], strides = [1, 1]} : vector<4x260xf32> to vector<4x192xf32>
    %c0_15 = arith.constant 0 : index
    %c3 = arith.constant 3 : index
    %c0_16 = arith.constant 0 : index
    %c0_17 = arith.constant 0 : index
    %19 = vector.load %arg2[%c0_15, %c3, %c0_16, %c0_17] : memref<1x25x2x4xf32, #tpu.memory_space<vmem>>, vector<1x1x2x4xf32>
    %20 = vector.shape_cast %19 : vector<1x1x2x4xf32> to vector<2x4xf32>
    %cst_18 = arith.constant dense<0.000000e+00> : vector<2x192xf32>
    %21 = tpu.matmul %20, %18, %cst_18 {dimension_numbers = #tpu.dot_dimension_numbers<[1], [0], [0], [1], [0, 0, 1, 1], [], []>} : vector<2x4xf32>, vector<4x192xf32>, vector<2x192xf32> -> vector<2x192xf32>
    %22 = arith.addf %17, %21 : vector<2x192xf32>
    %23 = vector.extract_strided_slice %1 {offsets = [0, 4], sizes = [4, 192], strides = [1, 1]} : vector<4x260xf32> to vector<4x192xf32>
    %c0_19 = arith.constant 0 : index
    %c4 = arith.constant 4 : index
    %c0_20 = arith.constant 0 : index
    %c0_21 = arith.constant 0 : index
    %24 = vector.load %arg2[%c0_19, %c4, %c0_20, %c0_21] : memref<1x25x2x4xf32, #tpu.memory_space<vmem>>, vector<1x1x2x4xf32>
    %25 = vector.shape_cast %24 : vector<1x1x2x4xf32> to vector<2x4xf32>
    %cst_22 = arith.constant dense<0.000000e+00> : vector<2x192xf32>
    %26 = tpu.matmul %25, %23, %cst_22 {dimension_numbers = #tpu.dot_dimension_numbers<[1], [0], [0], [1], [0, 0, 1, 1], [], []>} : vector<2x4xf32>, vector<4x192xf32>, vector<2x192xf32> -> vector<2x192xf32>
    %27 = arith.addf %22, %26 : vector<2x192xf32>
    %28 = vector.extract_strided_slice %1 {offsets = [0, 16], sizes = [4, 192], strides = [1, 1]} : vector<4x260xf32> to vector<4x192xf32>
    %c0_23 = arith.constant 0 : index
    %c5 = arith.constant 5 : index
    %c0_24 = arith.constant 0 : index
    %c0_25 = arith.constant 0 : index
    %29 = vector.load %arg2[%c0_23, %c5, %c0_24, %c0_25] : memref<1x25x2x4xf32, #tpu.memory_space<vmem>>, vector<1x1x2x4xf32>
    %30 = vector.shape_cast %29 : vector<1x1x2x4xf32> to vector<2x4xf32>
    %cst_26 = arith.constant dense<0.000000e+00> : vector<2x192xf32>
    %31 = tpu.matmul %30, %28, %cst_26 {dimension_numbers = #tpu.dot_dimension_numbers<[1], [0], [0], [1], [0, 0, 1, 1], [], []>} : vector<2x4xf32>, vector<4x192xf32>, vector<2x192xf32> -> vector<2x192xf32>
    %32 = arith.addf %27, %31 : vector<2x192xf32>
    %33 = vector.extract_strided_slice %1 {offsets = [0, 17], sizes = [4, 192], strides = [1, 1]} : vector<4x260xf32> to vector<4x192xf32>
    %c0_27 = arith.constant 0 : index
    %c6 = arith.constant 6 : index
    %c0_28 = arith.constant 0 : index
    %c0_29 = arith.constant 0 : index
    %34 = vector.load %arg2[%c0_27, %c6, %c0_28, %c0_29] : memref<1x25x2x4xf32, #tpu.memory_space<vmem>>, vector<1x1x2x4xf32>
    %35 = vector.shape_cast %34 : vector<1x1x2x4xf32> to vector<2x4xf32>
    %cst_30 = arith.constant dense<0.000000e+00> : vector<2x192xf32>
    %36 = tpu.matmul %35, %33, %cst_30 {dimension_numbers = #tpu.dot_dimension_numbers<[1], [0], [0], [1], [0, 0, 1, 1], [], []>} : vector<2x4xf32>, vector<4x192xf32>, vector<2x192xf32> -> vector<2x192xf32>
    %37 = arith.addf %32, %36 : vector<2x192xf32>
    %38 = vector.extract_strided_slice %1 {offsets = [0, 18], sizes = [4, 192], strides = [1, 1]} : vector<4x260xf32> to vector<4x192xf32>
    %c0_31 = arith.constant 0 : index
    %c7 = arith.constant 7 : index
    %c0_32 = arith.constant 0 : index
    %c0_33 = arith.constant 0 : index
    %39 = vector.load %arg2[%c0_31, %c7, %c0_32, %c0_33] : memref<1x25x2x4xf32, #tpu.memory_space<vmem>>, vector<1x1x2x4xf32>
    %40 = vector.shape_cast %39 : vector<1x1x2x4xf32> to vector<2x4xf32>
    %cst_34 = arith.constant dense<0.000000e+00> : vector<2x192xf32>
    %41 = tpu.matmul %40, %38, %cst_34 {dimension_numbers = #tpu.dot_dimension_numbers<[1], [0], [0], [1], [0, 0, 1, 1], [], []>} : vector<2x4xf32>, vector<4x192xf32>, vector<2x192xf32> -> vector<2x192xf32>
    %42 = arith.addf %37, %41 : vector<2x192xf32>
    %43 = vector.extract_strided_slice %1 {offsets = [0, 19], sizes = [4, 192], strides = [1, 1]} : vector<4x260xf32> to vector<4x192xf32>
    %c0_35 = arith.constant 0 : index
    %c8 = arith.constant 8 : index
    %c0_36 = arith.constant 0 : index
    %c0_37 = arith.constant 0 : index
    %44 = vector.load %arg2[%c0_35, %c8, %c0_36, %c0_37] : memref<1x25x2x4xf32, #tpu.memory_space<vmem>>, vector<1x1x2x4xf32>
    %45 = vector.shape_cast %44 : vector<1x1x2x4xf32> to vector<2x4xf32>
    %cst_38 = arith.constant dense<0.000000e+00> : vector<2x192xf32>
    %46 = tpu.matmul %45, %43, %cst_38 {dimension_numbers = #tpu.dot_dimension_numbers<[1], [0], [0], [1], [0, 0, 1, 1], [], []>} : vector<2x4xf32>, vector<4x192xf32>, vector<2x192xf32> -> vector<2x192xf32>
    %47 = arith.addf %42, %46 : vector<2x192xf32>
    %48 = vector.extract_strided_slice %1 {offsets = [0, 20], sizes = [4, 192], strides = [1, 1]} : vector<4x260xf32> to vector<4x192xf32>
    %c0_39 = arith.constant 0 : index
    %c9 = arith.constant 9 : index
    %c0_40 = arith.constant 0 : index
    %c0_41 = arith.constant 0 : index
    %49 = vector.load %arg2[%c0_39, %c9, %c0_40, %c0_41] : memref<1x25x2x4xf32, #tpu.memory_space<vmem>>, vector<1x1x2x4xf32>
    %50 = vector.shape_cast %49 : vector<1x1x2x4xf32> to vector<2x4xf32>
    %cst_42 = arith.constant dense<0.000000e+00> : vector<2x192xf32>
    %51 = tpu.matmul %50, %48, %cst_42 {dimension_numbers = #tpu.dot_dimension_numbers<[1], [0], [0], [1], [0, 0, 1, 1], [], []>} : vector<2x4xf32>, vector<4x192xf32>, vector<2x192xf32> -> vector<2x192xf32>
    %52 = arith.addf %47, %51 : vector<2x192xf32>
    %53 = vector.extract_strided_slice %1 {offsets = [0, 32], sizes = [4, 192], strides = [1, 1]} : vector<4x260xf32> to vector<4x192xf32>
    %c0_43 = arith.constant 0 : index
    %c10 = arith.constant 10 : index
    %c0_44 = arith.constant 0 : index
    %c0_45 = arith.constant 0 : index
    %54 = vector.load %arg2[%c0_43, %c10, %c0_44, %c0_45] : memref<1x25x2x4xf32, #tpu.memory_space<vmem>>, vector<1x1x2x4xf32>
    %55 = vector.shape_cast %54 : vector<1x1x2x4xf32> to vector<2x4xf32>
    %cst_46 = arith.constant dense<0.000000e+00> : vector<2x192xf32>
    %56 = tpu.matmul %55, %53, %cst_46 {dimension_numbers = #tpu.dot_dimension_numbers<[1], [0], [0], [1], [0, 0, 1, 1], [], []>} : vector<2x4xf32>, vector<4x192xf32>, vector<2x192xf32> -> vector<2x192xf32>
    %57 = arith.addf %52, %56 : vector<2x192xf32>
    %58 = vector.extract_strided_slice %1 {offsets = [0, 33], sizes = [4, 192], strides = [1, 1]} : vector<4x260xf32> to vector<4x192xf32>
    %c0_47 = arith.constant 0 : index
    %c11 = arith.constant 11 : index
    %c0_48 = arith.constant 0 : index
    %c0_49 = arith.constant 0 : index
    %59 = vector.load %arg2[%c0_47, %c11, %c0_48, %c0_49] : memref<1x25x2x4xf32, #tpu.memory_space<vmem>>, vector<1x1x2x4xf32>
    %60 = vector.shape_cast %59 : vector<1x1x2x4xf32> to vector<2x4xf32>
    %cst_50 = arith.constant dense<0.000000e+00> : vector<2x192xf32>
    %61 = tpu.matmul %60, %58, %cst_50 {dimension_numbers = #tpu.dot_dimension_numbers<[1], [0], [0], [1], [0, 0, 1, 1], [], []>} : vector<2x4xf32>, vector<4x192xf32>, vector<2x192xf32> -> vector<2x192xf32>
    %62 = arith.addf %57, %61 : vector<2x192xf32>
    %63 = vector.extract_strided_slice %1 {offsets = [0, 34], sizes = [4, 192], strides = [1, 1]} : vector<4x260xf32> to vector<4x192xf32>
    %c0_51 = arith.constant 0 : index
    %c12 = arith.constant 12 : index
    %c0_52 = arith.constant 0 : index
    %c0_53 = arith.constant 0 : index
    %64 = vector.load %arg2[%c0_51, %c12, %c0_52, %c0_53] : memref<1x25x2x4xf32, #tpu.memory_space<vmem>>, vector<1x1x2x4xf32>
    %65 = vector.shape_cast %64 : vector<1x1x2x4xf32> to vector<2x4xf32>
    %cst_54 = arith.constant dense<0.000000e+00> : vector<2x192xf32>
    %66 = tpu.matmul %65, %63, %cst_54 {dimension_numbers = #tpu.dot_dimension_numbers<[1], [0], [0], [1], [0, 0, 1, 1], [], []>} : vector<2x4xf32>, vector<4x192xf32>, vector<2x192xf32> -> vector<2x192xf32>
    %67 = arith.addf %62, %66 : vector<2x192xf32>
    %68 = vector.extract_strided_slice %1 {offsets = [0, 35], sizes = [4, 192], strides = [1, 1]} : vector<4x260xf32> to vector<4x192xf32>
    %c0_55 = arith.constant 0 : index
    %c13 = arith.constant 13 : index
    %c0_56 = arith.constant 0 : index
    %c0_57 = arith.constant 0 : index
    %69 = vector.load %arg2[%c0_55, %c13, %c0_56, %c0_57] : memref<1x25x2x4xf32, #tpu.memory_space<vmem>>, vector<1x1x2x4xf32>
    %70 = vector.shape_cast %69 : vector<1x1x2x4xf32> to vector<2x4xf32>
    %cst_58 = arith.constant dense<0.000000e+00> : vector<2x192xf32>
    %71 = tpu.matmul %70, %68, %cst_58 {dimension_numbers = #tpu.dot_dimension_numbers<[1], [0], [0], [1], [0, 0, 1, 1], [], []>} : vector<2x4xf32>, vector<4x192xf32>, vector<2x192xf32> -> vector<2x192xf32>
    %72 = arith.addf %67, %71 : vector<2x192xf32>
    %73 = vector.extract_strided_slice %1 {offsets = [0, 36], sizes = [4, 192], strides = [1, 1]} : vector<4x260xf32> to vector<4x192xf32>
    %c0_59 = arith.constant 0 : index
    %c14 = arith.constant 14 : index
    %c0_60 = arith.constant 0 : index
    %c0_61 = arith.constant 0 : index
    %74 = vector.load %arg2[%c0_59, %c14, %c0_60, %c0_61] : memref<1x25x2x4xf32, #tpu.memory_space<vmem>>, vector<1x1x2x4xf32>
    %75 = vector.shape_cast %74 : vector<1x1x2x4xf32> to vector<2x4xf32>
    %cst_62 = arith.constant dense<0.000000e+00> : vector<2x192xf32>
    %76 = tpu.matmul %75, %73, %cst_62 {dimension_numbers = #tpu.dot_dimension_numbers<[1], [0], [0], [1], [0, 0, 1, 1], [], []>} : vector<2x4xf32>, vector<4x192xf32>, vector<2x192xf32> -> vector<2x192xf32>
    %77 = arith.addf %72, %76 : vector<2x192xf32>
    %78 = vector.extract_strided_slice %1 {offsets = [0, 48], sizes = [4, 192], strides = [1, 1]} : vector<4x260xf32> to vector<4x192xf32>
    %c0_63 = arith.constant 0 : index
    %c15 = arith.constant 15 : index
    %c0_64 = arith.constant 0 : index
    %c0_65 = arith.constant 0 : index
    %79 = vector.load %arg2[%c0_63, %c15, %c0_64, %c0_65] : memref<1x25x2x4xf32, #tpu.memory_space<vmem>>, vector<1x1x2x4xf32>
    %80 = vector.shape_cast %79 : vector<1x1x2x4xf32> to vector<2x4xf32>
    %cst_66 = arith.constant dense<0.000000e+00> : vector<2x192xf32>
    %81 = tpu.matmul %80, %78, %cst_66 {dimension_numbers = #tpu.dot_dimension_numbers<[1], [0], [0], [1], [0, 0, 1, 1], [], []>} : vector<2x4xf32>, vector<4x192xf32>, vector<2x192xf32> -> vector<2x192xf32>
    %82 = arith.addf %77, %81 : vector<2x192xf32>
    %83 = vector.extract_strided_slice %1 {offsets = [0, 49], sizes = [4, 192], strides = [1, 1]} : vector<4x260xf32> to vector<4x192xf32>
    %c0_67 = arith.constant 0 : index
    %c16 = arith.constant 16 : index
    %c0_68 = arith.constant 0 : index
    %c0_69 = arith.constant 0 : index
    %84 = vector.load %arg2[%c0_67, %c16, %c0_68, %c0_69] : memref<1x25x2x4xf32, #tpu.memory_space<vmem>>, vector<1x1x2x4xf32>
    %85 = vector.shape_cast %84 : vector<1x1x2x4xf32> to vector<2x4xf32>
    %cst_70 = arith.constant dense<0.000000e+00> : vector<2x192xf32>
    %86 = tpu.matmul %85, %83, %cst_70 {dimension_numbers = #tpu.dot_dimension_numbers<[1], [0], [0], [1], [0, 0, 1, 1], [], []>} : vector<2x4xf32>, vector<4x192xf32>, vector<2x192xf32> -> vector<2x192xf32>
    %87 = arith.addf %82, %86 : vector<2x192xf32>
    %88 = vector.extract_strided_slice %1 {offsets = [0, 50], sizes = [4, 192], strides = [1, 1]} : vector<4x260xf32> to vector<4x192xf32>
    %c0_71 = arith.constant 0 : index
    %c17 = arith.constant 17 : index
    %c0_72 = arith.constant 0 : index
    %c0_73 = arith.constant 0 : index
    %89 = vector.load %arg2[%c0_71, %c17, %c0_72, %c0_73] : memref<1x25x2x4xf32, #tpu.memory_space<vmem>>, vector<1x1x2x4xf32>
    %90 = vector.shape_cast %89 : vector<1x1x2x4xf32> to vector<2x4xf32>
    %cst_74 = arith.constant dense<0.000000e+00> : vector<2x192xf32>
    %91 = tpu.matmul %90, %88, %cst_74 {dimension_numbers = #tpu.dot_dimension_numbers<[1], [0], [0], [1], [0, 0, 1, 1], [], []>} : vector<2x4xf32>, vector<4x192xf32>, vector<2x192xf32> -> vector<2x192xf32>
    %92 = arith.addf %87, %91 : vector<2x192xf32>
    %93 = vector.extract_strided_slice %1 {offsets = [0, 51], sizes = [4, 192], strides = [1, 1]} : vector<4x260xf32> to vector<4x192xf32>
    %c0_75 = arith.constant 0 : index
    %c18 = arith.constant 18 : index
    %c0_76 = arith.constant 0 : index
    %c0_77 = arith.constant 0 : index
    %94 = vector.load %arg2[%c0_75, %c18, %c0_76, %c0_77] : memref<1x25x2x4xf32, #tpu.memory_space<vmem>>, vector<1x1x2x4xf32>
    %95 = vector.shape_cast %94 : vector<1x1x2x4xf32> to vector<2x4xf32>
    %cst_78 = arith.constant dense<0.000000e+00> : vector<2x192xf32>
    %96 = tpu.matmul %95, %93, %cst_78 {dimension_numbers = #tpu.dot_dimension_numbers<[1], [0], [0], [1], [0, 0, 1, 1], [], []>} : vector<2x4xf32>, vector<4x192xf32>, vector<2x192xf32> -> vector<2x192xf32>
    %97 = arith.addf %92, %96 : vector<2x192xf32>
    %98 = vector.extract_strided_slice %1 {offsets = [0, 52], sizes = [4, 192], strides = [1, 1]} : vector<4x260xf32> to vector<4x192xf32>
    %c0_79 = arith.constant 0 : index
    %c19 = arith.constant 19 : index
    %c0_80 = arith.constant 0 : index
    %c0_81 = arith.constant 0 : index
    %99 = vector.load %arg2[%c0_79, %c19, %c0_80, %c0_81] : memref<1x25x2x4xf32, #tpu.memory_space<vmem>>, vector<1x1x2x4xf32>
    %100 = vector.shape_cast %99 : vector<1x1x2x4xf32> to vector<2x4xf32>
    %cst_82 = arith.constant dense<0.000000e+00> : vector<2x192xf32>
    %101 = tpu.matmul %100, %98, %cst_82 {dimension_numbers = #tpu.dot_dimension_numbers<[1], [0], [0], [1], [0, 0, 1, 1], [], []>} : vector<2x4xf32>, vector<4x192xf32>, vector<2x192xf32> -> vector<2x192xf32>
    %102 = arith.addf %97, %101 : vector<2x192xf32>
    %103 = vector.extract_strided_slice %1 {offsets = [0, 64], sizes = [4, 192], strides = [1, 1]} : vector<4x260xf32> to vector<4x192xf32>
    %c0_83 = arith.constant 0 : index
    %c20 = arith.constant 20 : index
    %c0_84 = arith.constant 0 : index
    %c0_85 = arith.constant 0 : index
    %104 = vector.load %arg2[%c0_83, %c20, %c0_84, %c0_85] : memref<1x25x2x4xf32, #tpu.memory_space<vmem>>, vector<1x1x2x4xf32>
    %105 = vector.shape_cast %104 : vector<1x1x2x4xf32> to vector<2x4xf32>
    %cst_86 = arith.constant dense<0.000000e+00> : vector<2x192xf32>
    %106 = tpu.matmul %105, %103, %cst_86 {dimension_numbers = #tpu.dot_dimension_numbers<[1], [0], [0], [1], [0, 0, 1, 1], [], []>} : vector<2x4xf32>, vector<4x192xf32>, vector<2x192xf32> -> vector<2x192xf32>
    %107 = arith.addf %102, %106 : vector<2x192xf32>
    %108 = vector.extract_strided_slice %1 {offsets = [0, 65], sizes = [4, 192], strides = [1, 1]} : vector<4x260xf32> to vector<4x192xf32>
    %c0_87 = arith.constant 0 : index
    %c21 = arith.constant 21 : index
    %c0_88 = arith.constant 0 : index
    %c0_89 = arith.constant 0 : index
    %109 = vector.load %arg2[%c0_87, %c21, %c0_88, %c0_89] : memref<1x25x2x4xf32, #tpu.memory_space<vmem>>, vector<1x1x2x4xf32>
    %110 = vector.shape_cast %109 : vector<1x1x2x4xf32> to vector<2x4xf32>
    %cst_90 = arith.constant dense<0.000000e+00> : vector<2x192xf32>
    %111 = tpu.matmul %110, %108, %cst_90 {dimension_numbers = #tpu.dot_dimension_numbers<[1], [0], [0], [1], [0, 0, 1, 1], [], []>} : vector<2x4xf32>, vector<4x192xf32>, vector<2x192xf32> -> vector<2x192xf32>
    %112 = arith.addf %107, %111 : vector<2x192xf32>
    %113 = vector.extract_strided_slice %1 {offsets = [0, 66], sizes = [4, 192], strides = [1, 1]} : vector<4x260xf32> to vector<4x192xf32>
    %c0_91 = arith.constant 0 : index
    %c22 = arith.constant 22 : index
    %c0_92 = arith.constant 0 : index
    %c0_93 = arith.constant 0 : index
    %114 = vector.load %arg2[%c0_91, %c22, %c0_92, %c0_93] : memref<1x25x2x4xf32, #tpu.memory_space<vmem>>, vector<1x1x2x4xf32>
    %115 = vector.shape_cast %114 : vector<1x1x2x4xf32> to vector<2x4xf32>
    %cst_94 = arith.constant dense<0.000000e+00> : vector<2x192xf32>
    %116 = tpu.matmul %115, %113, %cst_94 {dimension_numbers = #tpu.dot_dimension_numbers<[1], [0], [0], [1], [0, 0, 1, 1], [], []>} : vector<2x4xf32>, vector<4x192xf32>, vector<2x192xf32> -> vector<2x192xf32>
    %117 = arith.addf %112, %116 : vector<2x192xf32>
    %118 = vector.extract_strided_slice %1 {offsets = [0, 67], sizes = [4, 192], strides = [1, 1]} : vector<4x260xf32> to vector<4x192xf32>
    %c0_95 = arith.constant 0 : index
    %c23 = arith.constant 23 : index
    %c0_96 = arith.constant 0 : index
    %c0_97 = arith.constant 0 : index
    %119 = vector.load %arg2[%c0_95, %c23, %c0_96, %c0_97] : memref<1x25x2x4xf32, #tpu.memory_space<vmem>>, vector<1x1x2x4xf32>
    %120 = vector.shape_cast %119 : vector<1x1x2x4xf32> to vector<2x4xf32>
    %cst_98 = arith.constant dense<0.000000e+00> : vector<2x192xf32>
    %121 = tpu.matmul %120, %118, %cst_98 {dimension_numbers = #tpu.dot_dimension_numbers<[1], [0], [0], [1], [0, 0, 1, 1], [], []>} : vector<2x4xf32>, vector<4x192xf32>, vector<2x192xf32> -> vector<2x192xf32>
    %122 = arith.addf %117, %121 : vector<2x192xf32>
    %123 = vector.extract_strided_slice %1 {offsets = [0, 68], sizes = [4, 192], strides = [1, 1]} : vector<4x260xf32> to vector<4x192xf32>
    %c0_99 = arith.constant 0 : index
    %c24 = arith.constant 24 : index
    %c0_100 = arith.constant 0 : index
    %c0_101 = arith.constant 0 : index
    %124 = vector.load %arg2[%c0_99, %c24, %c0_100, %c0_101] : memref<1x25x2x4xf32, #tpu.memory_space<vmem>>, vector<1x1x2x4xf32>
    %125 = vector.shape_cast %124 : vector<1x1x2x4xf32> to vector<2x4xf32>
    %cst_102 = arith.constant dense<0.000000e+00> : vector<2x192xf32>
    %126 = tpu.matmul %125, %123, %cst_102 {dimension_numbers = #tpu.dot_dimension_numbers<[1], [0], [0], [1], [0, 0, 1, 1], [], []>} : vector<2x4xf32>, vector<4x192xf32>, vector<2x192xf32> -> vector<2x192xf32>
    %127 = arith.addf %122, %126 : vector<2x192xf32>
    %c0_103 = arith.constant 0 : index
    %c0_104 = arith.constant 0 : index
    %c0_105 = arith.constant 0 : index
    %128 = vector.load %arg3[%c0_103, %c0_104, %c0_105] : memref<1x2x192xf32, #tpu.memory_space<vmem>>, vector<1x2x192xf32>
    %129 = vector.shape_cast %128 : vector<1x2x192xf32> to vector<2x192xf32>
    %130 = vector.shape_cast %127 : vector<2x192xf32> to vector<1x2x192xf32>
    tpu.vector_store %arg3[%c0_103, %c0_104, %c0_105], %130 {strides = array<i32>} : memref<1x2x192xf32, #tpu.memory_space<vmem>>, vector<1x2x192xf32>,
    return
  }
  func.func @transform_0(%arg0: i32) -> (i32, i32, i32) {
    %c0_i32 = arith.constant 0 : i32
    %c0_i32_0 = arith.constant 0 : i32
    %c0_i32_1 = arith.constant 0 : i32
    return %arg0, %c0_i32, %c0_i32_0 : i32, i32, i32
  }
  func.func @transform_1(%arg0: i32) -> (i32, i32, i32, i32) {
    %c0_i32 = arith.constant 0 : i32
    %c0_i32_0 = arith.constant 0 : i32
    %c0_i32_1 = arith.constant 0 : i32
    %c0_i32_2 = arith.constant 0 : i32
    return %arg0, %c0_i32, %c0_i32_0, %c0_i32_1 : i32, i32, i32, i32
  }
  func.func @transform_2(%arg0: i32) -> (i32, i32, i32) {
    %c0_i32 = arith.constant 0 : i32
    %c0_i32_0 = arith.constant 0 : i32
    %c0_i32_1 = arith.constant 0 : i32
    return %arg0, %c0_i32, %c0_i32_0 : i32, i32, i32
  }
}

</mosaic_0001>

<bundles_post_ra>
// kernel: correlation_pallas.1
= control target key start
LH: loop header
LB: loop body
LE: loop exit
PB: predicated region body
PF: predicated region fallthrough
CT: control target
= control target key end

     0   :  { %s2699_s9 = smov 0   ;;  %s2915_s0 = inlined_call_operand.vmem [shape: f32[2,4,260], index: 0, kind: input, shape index: {}]   ;;  %s2916_s1 = inlined_call_operand.vmem [shape: f32[2,25,2,4], index: 1, kind: input, shape index: {}]   ;;  %s2917_s2 = inlined_call_operand.vmem [shape: f32[2,2,192], index: 2, kind: output, shape index: {}]  }
   0x1 LB: > { %s2454_s10 = sadd.s32 4294967295, %s2656_s9   ;;  %p2458_p0 = scmp.ge.s32.totalorder %s2656_s9, 1  ;;  %s2656_s9 = sphi %s2699_s9, %s12_s9  }
   0x2   : > { %p122_p1 = scmp.lt.s32.totalorder %s2656_s9, 3 }
   0x4   : > { %p123_p2 = pnand %p2458_p0, %p122_p1 }
   0x5   : > { %p149_p3 = scmp.lt.s32.totalorder (!%p123_p2), %s2454_s10, 1  ;;  %v2658_v0 = vmov (!%p123_p2), 0.0   ;;  %s2659_s15 = smov (!%p123_p2), 127   ;;  %vm181_vm0 = vcmask (!%p123_p2), 1043456   ;;  %vm175_vm1 = vcmask (!%p123_p2), 1039360   ;;  %vm1221_vm2 = vcmask (!%p123_p2), 769024  }
   0x6   : > { %126 = sbr.rel (%p123_p2) target bundleno = 455 (0x1c7), region = 28  ;;  %1294 = vmatprep.mubr.f32.mxu0 (!%p123_p2), %v2658_v0  ;;  %250 = vmatprep.mubr.f32.mxu1 (!%p123_p2), %v2658_v0  ;;  %s2660_s16 = smov (!%p123_p2), 94   ;;  %vm177_vm3 = vcmask (!%p123_p2), 31744   ;;  %vm1309_vm4 = vcmask (!%p123_p2), 760832   ;;  %vm1397_vm5 = vcmask (!%p123_p2), 752640   ;;  %vm341_vm6 = vcmask (!%p123_p2), 1031168  }
   0x7   : > { %s2661_s17 = smov (!%p123_p2), 93   ;;  %s2662_s18 = smov (!%p123_p2), 92   ;;  %vm1485_vm7 = vcmask (!%p123_p2), 654336   ;;  %vm429_vm8 = vcmask (!%p123_p2), 1022976   ;;  %vm1573_vm9 = vcmask (!%p123_p2), 646144   ;;  %vm517_vm10 = vcmask (!%p123_p2), 1014784  }
   0x8   : > { %s2663_s19 = smov (!%p123_p2), 126   ;;  %s2664_s20 = smov (!%p123_p2), 80   ;;  %vm1661_vm11 = vcmask (!%p123_p2), 637952   ;;  %vm605_vm12 = vcmask (!%p123_p2), 916480   ;;  %vm1749_vm13 = vcmask (!%p123_p2), 629760   ;;  %vm693_vm14 = vcmask (!%p123_p2), 908288  }
   0x9   : > { %s2665_s21 = smov (!%p123_p2), 125   ;;  %s2666_s22 = smov (!%p123_p2), 79   ;;  %vm1837_vm15 = vcmask (!%p123_p2), 621568  }
   0xa   : > { %s2667_s23 = smov (!%p123_p2), 124   ;;  %s2668_s24 = smov (!%p123_p2), 78  }
   0xb   : > { %s2669_s25 = smov (!%p123_p2), 112   ;;  %s2670_s26 = smov (!%p123_p2), 77  }
   0xc   : > { %s2671_s27 = smov (!%p123_p2), 111   ;;  %s2672_s28 = smov (!%p123_p2), 76  }
   0xd   : > { %s2919_s10 = smov (!%p149_p3, %s2454_s10), 1  ;;  %s2673_s29 = smov 110  }
   0xe   : > { %s2613_s11 = smul.u32 12, %s2919_s10  ;;  %s2674_s30 = smov 64  }
   0xf   : > { %s2675_s3 = smov 63   ;;  %s2676_s4 = smov 109  }
  0x10   : > { %s2715_s14 = scalar_lea.vmem %s2915_s0, %s2613_s11  ;;  %s2677_s5 = smov 62  }
  0x11   : > { %v2718_v1 = vld [vmem:[%s2715_s14] sm:$0xff]  ;;  %v165_v3 = vld [vmem:[%s2715_s14 + $0x8] sm:$0xf]  ;;  %s2678_s6 = smov 108   ;;  %s2679_s7 = smov 61  }
  0x12   : > { %171 = vrot.lane.b32.xlu1 %v2718_v1, %s2659_s15  ;;  %1217 = vrot.lane.b32.xlu0 %v2718_v1, %s2660_s16  ;;  %v2724_v2 = vcombine.high %v2718_v1, %v2718_v1  ;;  %s2680_s8 = smov 96   ;;  %s2681_s11 = smov 60  }
  0x13   : > { %s2682_s12 = smov 95   ;;  %s2614_s13 = smul.u32 50, %s2919_s10 }
  0x16   : > { %173 = vrot.lane.b32.xlu1 %v2724_v2, %s2659_s15  ;;  %1219 = vrot.lane.b32.xlu0 %v2724_v2, %s2660_s16  ;;  %s2777_s16 = scalar_lea.vmem %s2916_s1, %s2614_s13 }
  0x17   : > { %v2510_v8 = vld [vmem:[%s2777_s16 + $0x18] sm:$0x3]  ;;  %v2463_v9 = vld [vmem:[%s2777_s16 + $0x2] sm:$0x3]  ;;  %v2514_v17 = vld [vmem:[%s2777_s16 + $0x1a] sm:$0x3] }
  0x18   : > { %v166_v18 = vld [vmem:[%s2777_s16] sm:$0x3]  ;;  %v2518_v25 = vld [vmem:[%s2777_s16 + $0x1c] sm:$0x3]  ;;  %v2470_v26 = vld [vmem:[%s2777_s16 + $0x4] sm:$0x3] }
  0x19   : > { %v2522_v33 = vld [vmem:[%s2777_s16 + $0x1e] sm:$0x3]  ;;  %v2474_v34 = vld [vmem:[%s2777_s16 + $0x6] sm:$0x3]  ;;  %v2526_v41 = vld [vmem:[%s2777_s16 + $0x20] sm:$0x3] }
  0x1a   : > { %1307 = vrot.lane.b32.xlu1 %v2724_v2, %s2661_s17  ;;  %1305 = vrot.lane.b32.xlu0 %v2718_v1, %s2661_s17  ;;  %v2478_v42 = vld [vmem:[%s2777_s16 + $0x8] sm:$0x3]  ;;  %v2530_v49 = vld [vmem:[%s2777_s16 + $0x22] sm:$0x3]  ;;  %s2564_s17 = sshll.u32 %s2919_s10, 2 }
  0x1b   : > { %v2482_v50 = vld [vmem:[%s2777_s16 + $0xa] sm:$0x3]  ;;  %v2534_v57 = vld [vmem:[%s2777_s16 + $0x24] sm:$0x3]  ;;  %v2486_v58 = vld [vmem:[%s2777_s16 + $0xc] sm:$0x3] }
  0x1e   : > { %1395 = vrot.lane.b32.xlu1 %v2724_v2, %s2662_s18  ;;  %1393 = vrot.lane.b32.xlu0 %v2718_v1, %s2662_s18 }
  0x22   : > { %339 = vrot.lane.b32.xlu1 %v2724_v2, %s2663_s19  ;;  %337 = vrot.lane.b32.xlu0 %v2718_v1, %s2663_s19 }
  0x26   : > { %1483 = vrot.lane.b32.xlu1 %v2724_v2, %s2664_s20  ;;  %1481 = vrot.lane.b32.xlu0 %v2718_v1, %s2664_s20  ;;  %s163_s20 = scalar_lea.vmem %s2917_s2, %s2564_s17 }
  0x2a   : > { %427 = vrot.lane.b32.xlu1 %v2724_v2, %s2665_s21  ;;  %425 = vrot.lane.b32.xlu0 %v2718_v1, %s2665_s21 }
  0x2e   : > { %1571 = vrot.lane.b32.xlu1 %v2724_v2, %s2666_s22  ;;  %1569 = vrot.lane.b32.xlu0 %v2718_v1, %s2666_s22 }
  0x32   : > { %515 = vrot.lane.b32.xlu1 %v2724_v2, %s2667_s23  ;;  %513 = vrot.lane.b32.xlu0 %v2718_v1, %s2667_s23 }
  0x36   : > { %1659 = vrot.lane.b32.xlu1 %v2724_v2, %s2668_s24  ;;  %1657 = vrot.lane.b32.xlu0 %v2718_v1, %s2668_s24 }
  0x3a   : > { %603 = vrot.lane.b32.xlu1 %v2724_v2, %s2669_s25  ;;  %601 = vrot.lane.b32.xlu0 %v2718_v1, %s2669_s25 }
  0x3e   : > { %1747 = vrot.lane.b32.xlu1 %v2724_v2, %s2670_s26  ;;  %1745 = vrot.lane.b32.xlu0 %v2718_v1, %s2670_s26 }
  0x42   : > { %691 = vrot.lane.b32.xlu1 %v2724_v2, %s2671_s27  ;;  %689 = vrot.lane.b32.xlu0 %v2718_v1, %s2671_s27 }
  0x46   : > { %1835 = vrot.lane.b32.xlu1 %v2724_v2, %s2672_s28  ;;  %1833 = vrot.lane.b32.xlu0 %v2718_v1, %s2672_s28 }
  0x4a   : > { %779 = vrot.lane.b32.xlu1 %v2724_v2, %s2673_s29  ;;  %777 = vrot.lane.b32.xlu0 %v2718_v1, %s2673_s29 }
  0x4e   : > { %1923 = vrot.lane.b32.xlu1 %v2724_v2, %s2674_s30  ;;  %1921 = vrot.lane.b32.xlu0 %v2718_v1, %s2674_s30 }
  0x52   : > { %2014 = vrot.lane.b32.xlu1 %v165_v3, %s2675_s3  ;;  %2012 = vrot.lane.b32.xlu0 %v2724_v2, %s2675_s3 }
  0x56   : > { %867 = vrot.lane.b32.xlu1 %v2724_v2, %s2676_s4  ;;  %865 = vrot.lane.b32.xlu0 %v2718_v1, %s2676_s4 }
  0x5a   : > { %2103 = vrot.lane.b32.xlu1 %v2724_v2, %s2677_s5  ;;  %2010 = vrot.lane.b32.xlu0 %v2718_v1, %s2675_s3 }
  0x5e   : > { %953 = vrot.lane.b32.xlu1 %v2718_v1, %s2678_s6  ;;  %2105 = vrot.lane.b32.xlu0 %v165_v3, %s2677_s5 }
  0x62   : > { %2101 = vrot.lane.b32.xlu1 %v2718_v1, %s2677_s5  ;;  %955 = vrot.lane.b32.xlu0 %v2724_v2, %s2678_s6 }
  0x66   : > { %2196 = vrot.lane.b32.xlu1 %v165_v3, %s2679_s7  ;;  %2194 = vrot.lane.b32.xlu0 %v2724_v2, %s2679_s7 }
  0x6a   : > { %1043 = vrot.lane.b32.xlu1 %v2724_v2, %s2680_s8  ;;  %1041 = vrot.lane.b32.xlu0 %v2718_v1, %s2680_s8 }
  0x6e   : > { %2285 = vrot.lane.b32.xlu1 %v2724_v2, %s2681_s11  ;;  %2192 = vrot.lane.b32.xlu0 %v2718_v1, %s2679_s7 }
  0x72   : > { %1129 = vrot.lane.b32.xlu1 %v2718_v1, %s2682_s12  ;;  %2287 = vrot.lane.b32.xlu0 %v165_v3, %s2681_s11  ;;  %v2490_v3 = vld [vmem:[%s2777_s16 + $0xe] sm:$0x3] }
  0x76   : > { %2283 = vrot.lane.b32.xlu1 %v2718_v1, %s2681_s11  ;;  %1131 = vrot.lane.b32.xlu0 %v2724_v2, %s2682_s12 }
  0x84   : > { %v172_v4 = vpop.permute.xlu1 %171  ;;  %v1218_v5 = vpop.permute.xlu0 %1217 }
  0x88   : > { %v174_v6 = vpop.permute.xlu1 %173  ;;  %v1220_v7 = vpop.permute.xlu0 %1219 }
  0x89   : > { %2464 = vmatprep.subr.msk.mxu1 %vm181_vm0, %v174_v6  ;;  %2511 = vmatprep.subr.msk.mxu0 %vm181_vm0, %v1220_v7  ;;  %v176_v10 = vsel %vm175_vm1, %v172_v4, %v174_v6  ;;  %v1222_v11 = vsel %vm1221_vm2, %v1218_v5, %v1220_v7  ;;  %vm781_vm1 = vcmask 900096   ;;  %vm1925_vm2 = vcmask 523264  }
  0x8a   : > { %2465 = vmatpush1.msk.msra.mxu1 %vm181_vm0, %v176_v10  ;;  %2512 = vmatpush1.msk.msra.mxu0 %vm181_vm0, %v1222_v11  ;;  %v2542_v10 = vld [vmem:[%s2777_s16 + $0x28] sm:$0x3]  ;;  %v2494_v11 = vld [vmem:[%s2777_s16 + $0x10] sm:$0x3] }
  0x8b   : > { %2513 = vmatmul.mubr.msk.f32.vlgmr.msra.gmra.mrb[0].mxu0 %vm177_vm3, %v2510_v8  ;;  %2466 = vmatmul.mubr.msk.f32.vlgmr.msra.gmra.mrb[0].mxu1 %vm177_vm3, %v2463_v9 }
  0x8c   : > { %v1308_v12 = vpop.permute.xlu1 %1307  ;;  %v1306_v13 = vpop.permute.xlu0 %1305  ;;  %1382 = vmatprep.mubr.f32.mxu0 %v2658_v0  ;;  %2467 = vmatprep.subr.msk.mxu1 %vm181_vm0, %v2724_v2  ;;  %v2538_v2 = vld [vmem:[%s2777_s16 + $0x26] sm:$0x3] }
  0x8d   : > { %v1310_v14 = vsel %vm1309_vm4, %v1306_v13, %v1308_v12  ;;  %2515 = vmatprep.subr.msk.mxu0 %vm181_vm0, %v1308_v12  ;;  %2468 = vmatpush1.msk.msra.mxu1 %vm181_vm0, %v2718_v1  ;;  %vm2016_vm4 = vcmask 515072  }
  0x8e   : > { %2516 = vmatpush1.msk.msra.mxu0 %vm181_vm0, %v1310_v14  ;;  %328 = vmatprep.mubr.f32.mxu1 %v2658_v0 }
  0x90   : > { %v1396_v15 = vpop.permute.xlu1 %1395  ;;  %v1394_v16 = vpop.permute.xlu0 %1393 }
  0x91   : > { %v1398_v19 = vsel %vm1397_vm5, %v1394_v16, %v1396_v15  ;;  %2519 = vmatprep.subr.msk.mxu0 %vm181_vm0, %v1396_v15  ;;  %vm869_vm5 = vcmask 891904  }
  0x93   : > { %2517 = vmatmul.mubr.msk.f32.vlgmr.msra.gmra.mrb[0].mxu0 %vm177_vm3, %v2514_v17  ;;  %2469 = vmatmul.mubr.msk.f32.vlgmr.msra.gmra.mrb[0].mxu1 %vm177_vm3, %v166_v18  ;;  %v2546_v18 = vld [vmem:[%s2777_s16 + $0x2a] sm:$0x3] }
  0x94   : > { %2520 = vmatpush1.msk.msra.mxu0 %vm181_vm0, %v1398_v19  ;;  %v340_v20 = vpop.permute.xlu1 %339  ;;  %v338_v21 = vpop.permute.xlu0 %337  ;;  %1470 = vmatprep.mubr.f32.mxu0 %v2658_v0 }
  0x95   : > { %v342_v22 = vsel %vm341_vm6, %v338_v21, %v340_v20  ;;  %2471 = vmatprep.subr.msk.mxu1 %vm181_vm0, %v340_v20  ;;  %414 = vmatprep.mubr.f32.mxu1 %v2658_v0  ;;  %vm2107_vm6 = vcmask 506880  }
  0x96   : > { %2472 = vmatpush1.msk.msra.mxu1 %vm181_vm0, %v342_v22  ;;  %v2498_v22 = vld [vmem:[%s2777_s16 + $0x12] sm:$0x3] }
  0x98   : > { %v1484_v23 = vpop.permute.xlu1 %1483  ;;  %v1482_v24 = vpop.permute.xlu0 %1481 }
  0x99   : > { %v1486_v27 = vsel %vm1485_vm7, %v1482_v24, %v1484_v23  ;;  %2523 = vmatprep.subr.msk.mxu0 %vm181_vm0, %v1484_v23  ;;  %vm957_vm7 = vcmask 883712  }
  0x9b   : > { %2521 = vmatmul.mubr.msk.f32.vlgmr.msra.gmra.mrb[0].mxu0 %vm177_vm3, %v2518_v25  ;;  %2473 = vmatmul.mubr.msk.f32.vlgmr.msra.gmra.mrb[0].mxu1 %vm177_vm3, %v2470_v26 }
  0x9c   : > { %2524 = vmatpush1.msk.msra.mxu0 %vm181_vm0, %v1486_v27  ;;  %v428_v28 = vpop.permute.xlu1 %427  ;;  %v426_v29 = vpop.permute.xlu0 %425  ;;  %1558 = vmatprep.mubr.f32.mxu0 %v2658_v0  ;;  %v2550_v27 = vld [vmem:[%s2777_s16 + $0x2c] sm:$0x3] }
  0x9d   : > { %v430_v30 = vsel %vm429_vm8, %v426_v29, %v428_v28  ;;  %2475 = vmatprep.subr.msk.mxu1 %vm181_vm0, %v428_v28  ;;  %502 = vmatprep.mubr.f32.mxu1 %v2658_v0  ;;  %vm2198_vm8 = vcmask 498688  }
  0x9e   : > { %2476 = vmatpush1.msk.msra.mxu1 %vm181_vm0, %v430_v30 }
  0xa0   : > { %v1572_v31 = vpop.permute.xlu1 %1571  ;;  %v1570_v32 = vpop.permute.xlu0 %1569 }
  0xa1   : > { %v1574_v35 = vsel %vm1573_vm9, %v1570_v32, %v1572_v31  ;;  %2527 = vmatprep.subr.msk.mxu0 %vm181_vm0, %v1572_v31  ;;  %vm1045_vm9 = vcmask 785408   ;;  %v2502_v31 = vld [vmem:[%s2777_s16 + $0x14] sm:$0x3] }
  0xa3   : > { %2525 = vmatmul.mubr.msk.f32.vlgmr.msra.gmra.mrb[0].mxu0 %vm177_vm3, %v2522_v33  ;;  %2477 = vmatmul.mubr.msk.f32.vlgmr.msra.gmra.mrb[0].mxu1 %vm177_vm3, %v2474_v34 }
  0xa4   : > { %2528 = vmatpush1.msk.msra.mxu0 %vm181_vm0, %v1574_v35  ;;  %v516_v36 = vpop.permute.xlu1 %515  ;;  %v514_v37 = vpop.permute.xlu0 %513  ;;  %1646 = vmatprep.mubr.f32.mxu0 %v2658_v0  ;;  %v2554_v35 = vld [vmem:[%s2777_s16 + $0x2e] sm:$0x3] }
  0xa5   : > { %v518_v38 = vsel %vm517_vm10, %v514_v37, %v516_v36  ;;  %2479 = vmatprep.subr.msk.mxu1 %vm181_vm0, %v516_v36  ;;  %590 = vmatprep.mubr.f32.mxu1 %v2658_v0  ;;  %vm2289_vm10 = vcmask 490496  }
  0xa6   : > { %2480 = vmatpush1.msk.msra.mxu1 %vm181_vm0, %v518_v38 }
  0xa8   : > { %v1660_v39 = vpop.permute.xlu1 %1659  ;;  %v1658_v40 = vpop.permute.xlu0 %1657 }
  0xa9   : > { %v1662_v43 = vsel %vm1661_vm11, %v1658_v40, %v1660_v39  ;;  %2531 = vmatprep.subr.msk.mxu0 %vm181_vm0, %v1660_v39  ;;  %vm1133_vm11 = vcmask 777216  }
  0xab   : > { %2529 = vmatmul.mubr.msk.f32.vlgmr.msra.gmra.mrb[0].mxu0 %vm177_vm3, %v2526_v41  ;;  %2481 = vmatmul.mubr.msk.f32.vlgmr.msra.gmra.mrb[0].mxu1 %vm177_vm3, %v2478_v42  ;;  %v2506_v42 = vld [vmem:[%s2777_s16 + $0x16] sm:$0x3] }
  0xac   : > { %2532 = vmatpush1.msk.msra.mxu0 %vm181_vm0, %v1662_v43  ;;  %v604_v44 = vpop.permute.xlu1 %603  ;;  %v602_v45 = vpop.permute.xlu0 %601  ;;  %1734 = vmatprep.mubr.f32.mxu0 %v2658_v0  ;;  %v2558_v43 = vld [vmem:[%s2777_s16 + $0x30] sm:$0x3] }
  0xad   : > { %v606_v46 = vsel %vm605_vm12, %v602_v45, %v604_v44  ;;  %2483 = vmatprep.subr.msk.mxu1 %vm181_vm0, %v604_v44  ;;  %678 = vmatprep.mubr.f32.mxu1 %v2658_v0  ;;  %vm2383_vm12 = vcmask 1041408  }
  0xae   : > { %2484 = vmatpush1.msk.msra.mxu1 %vm181_vm0, %v606_v46 }
  0xb0   : > { %v1748_v47 = vpop.permute.xlu1 %1747  ;;  %v1746_v48 = vpop.permute.xlu0 %1745 }
  0xb1   : > { %v1750_v51 = vsel %vm1749_vm13, %v1746_v48, %v1748_v47  ;;  %2535 = vmatprep.subr.msk.mxu0 %vm181_vm0, %v1748_v47  ;;  %v2378_v47 = vlaneseq  ;;  %vm2384_vm13 = vcmask 519170  }
  0xb3   : > { %2533 = vmatmul.mubr.msk.f32.vlgmr.msra.gmra.mrb[0].mxu0 %vm177_vm3, %v2530_v49  ;;  %2485 = vmatmul.mubr.msk.f32.vlgmr.msra.gmra.mrb[0].mxu1 %vm177_vm3, %v2482_v50  ;;  %v2379_v49 = vshrl.u32 %v2378_v47, 7 }
  0xb4   : > { %2536 = vmatpush1.msk.msra.mxu0 %vm181_vm0, %v1750_v51  ;;  %v692_v52 = vpop.permute.xlu1 %691  ;;  %v690_v53 = vpop.permute.xlu0 %689  ;;  %1822 = vmatprep.mubr.f32.mxu0 %v2658_v0 }
  0xb5   : > { %v694_v54 = vsel %vm693_vm14, %v690_v53, %v692_v52  ;;  %2487 = vmatprep.subr.msk.mxu1 %vm181_vm0, %v692_v52  ;;  %766 = vmatprep.mubr.f32.mxu1 %v2658_v0 }
  0xb6   : > { %2488 = vmatpush1.msk.msra.mxu1 %vm181_vm0, %v694_v54 }
  0xb8   : > { %v1836_v55 = vpop.permute.xlu1 %1835  ;;  %v1834_v56 = vpop.permute.xlu0 %1833 }
  0xb9   : > { %v1838_v59 = vsel %vm1837_vm15, %v1834_v56, %v1836_v55  ;;  %2539 = vmatprep.subr.msk.mxu0 %vm181_vm0, %v1836_v55 }
  0xbb   : > { %2537 = vmatmul.mubr.msk.f32.vlgmr.msra.gmra.mrb[0].mxu0 %vm177_vm3, %v2534_v57  ;;  %2489 = vmatmul.mubr.msk.f32.vlgmr.msra.gmra.mrb[0].mxu1 %vm177_vm3, %v2486_v58 }
  0xbc   : > { %2540 = vmatpush1.msk.msra.mxu0 %vm181_vm0, %v1838_v59  ;;  %v780_v60 = vpop.permute.xlu1 %779  ;;  %v778_v61 = vpop.permute.xlu0 %777  ;;  %1910 = vmatprep.mubr.f32.mxu0 %v2658_v0 }
  0xbd   : > { %v782_v62 = vsel %vm781_vm1, %v778_v61, %v780_v60  ;;  %2491 = vmatprep.subr.msk.mxu1 %vm181_vm0, %v780_v60  ;;  %854 = vmatprep.mubr.f32.mxu1 %v2658_v0 }
  0xbe   : > { %2492 = vmatpush1.msk.msra.mxu1 %vm181_vm0, %v782_v62 }
  0xc0   : > { %v1924_v63 = vpop.permute.xlu1 %1923  ;;  %v1922_v1 = vpop.permute.xlu0 %1921 }
  0xc1   : > { %v1926_v4 = vsel %vm1925_vm2, %v1922_v1, %v1924_v63  ;;  %2543 = vmatprep.subr.msk.mxu0 %vm181_vm0, %v1924_v63 }
  0xc3   : > { %2541 = vmatmul.mubr.msk.f32.vlgmr.msra.gmra.mrb[0].mxu0 %vm177_vm3, %v2538_v2  ;;  %2493 = vmatmul.mubr.msk.f32.vlgmr.msra.gmra.mrb[0].mxu1 %vm177_vm3, %v2490_v3 }
  0xc4   : > { %2544 = vmatpush1.msk.msra.mxu0 %vm181_vm0, %v1926_v4  ;;  %v2015_v5 = vpop.permute.xlu1 %2014  ;;  %v2013_v6 = vpop.permute.xlu0 %2012  ;;  %1998 = vmatprep.mubr.f32.mxu0 %v2658_v0 }
  0xc5   : > { %v2018_v7 = vsel %vm2016_vm4, %v2013_v6, %v2015_v5  ;;  %942 = vmatprep.mubr.f32.mxu1 %v2658_v0 }
  0xc6   : > { %2547 = vmatprep.subr.msk.mxu0 %vm181_vm0, %v2018_v7 }
  0xc8   : > { %v868_v8 = vpop.permute.xlu1 %867  ;;  %v866_v9 = vpop.permute.xlu0 %865 }
  0xc9   : > { %v870_v12 = vsel %vm869_vm5, %v866_v9, %v868_v8  ;;  %2495 = vmatprep.subr.msk.mxu1 %vm181_vm0, %v868_v8 }
  0xca   : > { %2496 = vmatpush1.msk.msra.mxu1 %vm181_vm0, %v870_v12 }
  0xcb   : > { %2545 = vmatmul.mubr.msk.f32.vlgmr.msra.gmra.mrb[0].mxu0 %vm177_vm3, %v2542_v10  ;;  %2497 = vmatmul.mubr.msk.f32.vlgmr.msra.gmra.mrb[0].mxu1 %vm177_vm3, %v2494_v11 }
  0xcc   : > { %v2104_v13 = vpop.permute.xlu1 %2103  ;;  %v2011_v14 = vpop.permute.xlu0 %2010  ;;  %2090 = vmatprep.mubr.f32.mxu0 %v2658_v0  ;;  %1030 = vmatprep.mubr.f32.mxu1 %v2658_v0 }
  0xcd   : > { %v2017_v15 = vsel %vm2016_vm4, %v2011_v14, %v2013_v6 }
  0xce   : > { %2548 = vmatpush1.msk.msra.mxu0 %vm181_vm0, %v2017_v15 }
  0xd0   : > { %v954_v16 = vpop.permute.xlu1 %953  ;;  %v2106_v17 = vpop.permute.xlu0 %2105 }
  0xd1   : > { %v2109_v19 = vsel %vm2107_vm6, %v2104_v13, %v2106_v17 }
  0xd2   : > { %2551 = vmatprep.subr.msk.mxu0 %vm181_vm0, %v2109_v19 }
  0xd3   : > { %2549 = vmatmul.mubr.msk.f32.vlgmr.msra.gmra.mrb[0].mxu0 %vm177_vm3, %v2546_v18 }
  0xd4   : > { %v2102_v20 = vpop.permute.xlu1 %2101  ;;  %v956_v21 = vpop.permute.xlu0 %955  ;;  %2181 = vmatprep.mubr.f32.mxu0 %v2658_v0 }
  0xd5   : > { %v2108_v23 = vsel %vm2107_vm6, %v2102_v20, %v2104_v13  ;;  %v958_v24 = vsel %vm957_vm7, %v954_v16, %v956_v21  ;;  %2499 = vmatprep.subr.msk.mxu1 %vm181_vm0, %v956_v21 }
  0xd6   : > { %2500 = vmatpush1.msk.msra.mxu1 %vm181_vm0, %v958_v24  ;;  %2552 = vmatpush1.msk.msra.mxu0 %vm181_vm0, %v2108_v23 }
  0xd7   : > { %2501 = vmatmul.mubr.msk.f32.vlgmr.msra.gmra.mrb[0].mxu1 %vm177_vm3, %v2498_v22 }
  0xd8   : > { %v2197_v25 = vpop.permute.xlu1 %2196  ;;  %v2195_v26 = vpop.permute.xlu0 %2194  ;;  %1118 = vmatprep.mubr.f32.mxu1 %v2658_v0 }
  0xd9   : > { %v2200_v28 = vsel %vm2198_vm8, %v2195_v26, %v2197_v25 }
  0xda   : > { %2555 = vmatprep.subr.msk.mxu0 %vm181_vm0, %v2200_v28 }
  0xdb   : > { %2553 = vmatmul.mubr.msk.f32.vlgmr.msra.gmra.mrb[0].mxu0 %vm177_vm3, %v2550_v27 }
  0xdc   : > { %v1044_v29 = vpop.permute.xlu1 %1043  ;;  %v1042_v30 = vpop.permute.xlu0 %1041  ;;  %2272 = vmatprep.mubr.f32.mxu0 %v2658_v0 }
  0xdd   : > { %v1046_v32 = vsel %vm1045_vm9, %v1042_v30, %v1044_v29  ;;  %2503 = vmatprep.subr.msk.mxu1 %vm181_vm0, %v1044_v29 }
  0xde   : > { %2504 = vmatpush1.msk.msra.mxu1 %vm181_vm0, %v1046_v32 }
  0xdf   : > { %2505 = vmatmul.mubr.msk.f32.vlgmr.msra.gmra.mrb[0].mxu1 %vm177_vm3, %v2502_v31 }
  0xe0   : > { %v2286_v33 = vpop.permute.xlu1 %2285  ;;  %v2193_v34 = vpop.permute.xlu0 %2192  ;;  %1206 = vmatprep.mubr.f32.mxu1 %v2658_v0 }
  0xe1   : > { %v2199_v36 = vsel %vm2198_vm8, %v2193_v34, %v2195_v26 }
  0xe2   : > { %2556 = vmatpush1.msk.msra.mxu0 %vm181_vm0, %v2199_v36 }
  0xe3   : > { %2557 = vmatmul.mubr.msk.f32.vlgmr.msra.gmra.mrb[0].mxu0 %vm177_vm3, %v2554_v35 }
  0xe4   : > { %v1130_v37 = vpop.permute.xlu1 %1129  ;;  %v2288_v38 = vpop.permute.xlu0 %2287  ;;  %2363 = vmatprep.mubr.f32.mxu0 %v2658_v0  ;;  %v2683_v0 = vmov 1983009808  }
  0xe5   : > { %v2291_v39 = vsel %vm2289_vm10, %v2286_v33, %v2288_v38  ;;  %v2376_v46 = vunpack.c.l.s4 %v2683_v0 }
  0xe6   : > { %2559 = vmatprep.subr.msk.mxu0 %vm181_vm0, %v2291_v39 }
  0xe7   : > { %v2377_v48 = vunpack.c.0.s8 %v2376_v46 }
  0xe8   : > { %v2284_v40 = vpop.permute.xlu1 %2283  ;;  %v1132_v41 = vpop.permute.xlu0 %1131 }
  0xe9   : > { %v2290_v44 = vsel %vm2289_vm10, %v2284_v40, %v2286_v33  ;;  %v1134_v45 = vsel %vm1133_vm11, %v1130_v37, %v1132_v41  ;;  %2507 = vmatprep.subr.msk.mxu1 %vm181_vm0, %v1132_v41  ;;  %v2380_v56 = vsub.s32 %v2377_v48, %v2379_v49 }
  0xea   : > { %2508 = vmatpush1.msk.msra.mxu1 %vm181_vm0, %v1134_v45  ;;  %2560 = vmatpush1.msk.msra.mxu0 %vm181_vm0, %v2290_v44  ;;  %vm2385_vm0 = vmor %vm2384_vm13, %vm2383_vm12 }
  0xeb   : > { %2509 = vmatmul.mubr.msk.f32.vlgmr.msra.gmra.mrb[0].mxu1 %vm177_vm3, %v2506_v42  ;;  %2561 = vmatmul.mubr.msk.f32.vlgmr.msra.gmra.mrb[0].mxu0 %vm177_vm3, %v2558_v43 }
 0x1be   : > { %v1208_v50 = vpop.f32.mrb[0].mxu1  ;;  %v2365_v51 = vpop.f32.mrb[0].mxu0 }
 0x1bf   : > { %v2565_v52 = vadd.f32 %v2365_v51, %v1208_v50  ;;  %v1210_v53 = vpop.f32.mrb[1].mxu1  ;;  %v2367_v54 = vpop.f32.mrb[1].mxu0 }
 0x1c0   : > { %v2566_v55 = vadd.f32 %v2367_v54, %v1210_v53 }
 0x1c2   : > { %v2374_v57 = vcombine.low %v2565_v52, %v2566_v55 }
 0x1c4   : > { %v2381_v58 = vrot.slane %v2374_v57, %v2380_v56 }
 0x1c6   : > { %2386 = vst.msk [vmem:[%s163_s20] sm:$0xf] %vm2385_vm0, %v2381_v58 }
 0x1c7 PF: > { %s12_s9 = sadd.s32 1, %s2656_s9  }
 0x1c8   : > { %p9_p4 = scmp.ge.s32.totalorder %s12_s9, 4  }
 0x1ca   :  { %11 = sbr.rel (!%p9_p4) target bundleno = 1 (0x1), region = 85 }

</bundles_post_ra>
